<compile_context>
chip_gen: v6e
topology: v6e:2x2x1
jax: 0.10.0
libtpu: 0.0.40
codegen_flags: <defaults>
</compile_context>

<pallas_src>
import jax
import jax.numpy as jnp
from jax.experimental import pallas as pl
from jax.experimental.pallas import tpu as pltpu

_INV_SQRT2 = 0.7071067811865476


def _attention_pool_kernel(w_ref, q_ref, k_ref, v_ref, o_ref):
    # w_ref : (1,)   SMEM scalar (bandwidth w)
    # q_ref : (1, D) VMEM row    (queries along lanes)
    # k_ref : (1, D) VMEM row    (keys, contiguous DMA; moved to sublanes below)
    # v_ref : (1, D) VMEM row    (values, stays lane-dense)
    # o_ref : (1, D) VMEM row    (lane-dense pooled output)

    # Fold the /2 of the Gaussian into the bandwidth: ((x)*w)^2/2 == (x*w/sqrt(2))^2.
    scale = w_ref[0] * _INV_SQRT2                         # scalar ALU

    q_row = q_ref[...]                                    # (1, D) queries on lanes
    k_col = jnp.transpose(k_ref[...])                     # (D, 1) keys on sublanes (XLU)

    # s[j, i] = -((q[i] - k[j]) * w)^2 / 2   (keys on sublanes, queries on lanes)
    s = -jnp.square((q_row - k_col) * scale)              # (D, D), all <= 0

    # Numerically stable softmax over the key (sublane) axis, fused with the
    # value-weighted sum.  The (D, D) attention matrix is never normalized /
    # materialized as probabilities: we reduce the numerator and denominator
    # over the key axis and divide the two (1, D) vectors exactly at the end.
    m = jnp.max(s, axis=0, keepdims=True)                 # (1, D)
    e = jnp.exp(s - m)                                     # (D, D)
    denom = jnp.sum(e, axis=0, keepdims=True)              # (1, D)
    # weighted[i] = sum_j v[j] * e[j, i]  — one (1,D)@(D,D) MXU pass; keeps v
    # lane-dense and avoids a (D,D) elementwise multiply.
    weighted = jnp.dot(v_ref[...], e, preferred_element_type=jnp.float32)  # (1, D)

    o_ref[...] = (weighted / denom).astype(o_ref.dtype)   # exact divide


def attention_pool_with_parameter(q, k, v, w):
    """q, k, v: (1, D) float32 ; w: (1,) float32  ->  (1, D) float32."""
    d = q.shape[1]
    return pl.pallas_call(
        _attention_pool_kernel,
        out_shape=jax.ShapeDtypeStruct((1, d), jnp.float32),
        in_specs=[
            pl.BlockSpec(memory_space=pltpu.MemorySpace.SMEM),   # w  (1,)
            pl.BlockSpec(memory_space=pltpu.MemorySpace.VMEM),   # q  (1, D)
            pl.BlockSpec(memory_space=pltpu.MemorySpace.VMEM),   # k  (1, D)
            pl.BlockSpec(memory_space=pltpu.MemorySpace.VMEM),   # v  (1, D)
        ],
        out_specs=pl.BlockSpec(memory_space=pltpu.MemorySpace.VMEM),
    )(w, q, k, v)


def _reference(q, k, v, w):
    """Pure-JAX reference mirroring the PyTorch forward exactly."""
    d = k.shape[1]
    qq = jnp.repeat(q.reshape(-1), d).reshape(-1, d)             # (D, D)
    attn = jax.nn.softmax(-jnp.square((qq - k) * w[0]) / 2.0, axis=1)
    return (attn @ v.reshape(d, 1)).reshape(1, d)


if __name__ == "__main__":
    D = 50  # matches the (1, 50) annotation in the PyTorch module
    key = jax.random.PRNGKey(0)
    key_q, key_k, key_v, key_w = jax.random.split(key, 4)

    q = jax.random.normal(key_q, (1, D), dtype=jnp.float32)
    k = jax.random.normal(key_k, (1, D), dtype=jnp.float32)
    v = jax.random.normal(key_v, (1, D), dtype=jnp.float32)
    # nn.Parameter(torch.rand((1,))): deterministic uniform [0, 1) init here.
    w = jax.random.uniform(key_w, (1,), dtype=jnp.float32)

    out = attention_pool_with_parameter(q, k, v, w)
    out = jax.block_until_ready(out)

    ref = _reference(q, k, v, w)
    assert out.shape == (1, D)
    # Exact divide restores the tight tolerance (was 2e-3 with approx recip).
    assert jnp.allclose(out, ref, atol=1e-5, rtol=1e-5), (out, ref)

    print("KERNEL_OK")
</pallas_src>

<mosaic_0001>
module attributes {stable_mosaic.version = 11 : i64} {
  func.func @_attention_pool_kernel(%arg0: memref<1xf32, #tpu.memory_space<smem>>, %arg1: memref<1x50xf32, #tpu.memory_space<vmem>>, %arg2: memref<1x50xf32, #tpu.memory_space<vmem>>, %arg3: memref<1x50xf32, #tpu.memory_space<vmem>>, %arg4: memref<1x50xf32, #tpu.memory_space<vmem>>) attributes {dimension_semantics = [], scalar_prefetch = 0 : i64, scratch_operands = 0 : i64, tpu.core_type = #tpu.core_type<tc>} {
    %c0 = arith.constant 0 : index
    %0 = memref.load %arg0[%c0] : memref<1xf32, #tpu.memory_space<smem>>
    %cst = arith.constant 0.707106769 : f32
    %1 = arith.mulf %0, %cst : f32
    %c0_0 = arith.constant 0 : index
    %c0_1 = arith.constant 0 : index
    %2 = vector.load %arg1[%c0_0, %c0_1] : memref<1x50xf32, #tpu.memory_space<vmem>>, vector<1x50xf32>
    %c0_2 = arith.constant 0 : index
    %c0_3 = arith.constant 0 : index
    %3 = vector.load %arg2[%c0_2, %c0_3] : memref<1x50xf32, #tpu.memory_space<vmem>>, vector<1x50xf32>
    %4 = tpu.transpose %3, [1, 0] : vector<1x50xf32> -> vector<50x1xf32>
    %5 = vector.broadcast %2 : vector<1x50xf32> to vector<50x50xf32>
    %6 = vector.broadcast %4 : vector<50x1xf32> to vector<50x50xf32>
    %7 = arith.subf %5, %6 : vector<50x50xf32>
    %8 = vector.broadcast %1 : f32 to vector<50x50xf32>
    %9 = arith.mulf %7, %8 : vector<50x50xf32>
    %10 = arith.mulf %9, %9 : vector<50x50xf32>
    %cst_4 = arith.constant 0.000000e+00 : f32
    %11 = vector.broadcast %cst_4 : f32 to vector<50x50xf32>
    %12 = arith.subf %11, %10 : vector<50x50xf32>
    %cst_5 = arith.constant dense<0xFF800000> : vector<50xf32>
    %13 = vector.multi_reduction <maximumf>, %12, %cst_5 [0] : vector<50x50xf32> to vector<50xf32>
    %14 = vector.shape_cast %13 : vector<50xf32> to vector<1x50xf32>
    %15 = vector.broadcast %14 : vector<1x50xf32> to vector<50x50xf32>
    %16 = arith.subf %12, %15 : vector<50x50xf32>
    %17 = math.exp %16 : vector<50x50xf32>
    %cst_6 = arith.constant dense<0.000000e+00> : vector<50xf32>
    %18 = vector.multi_reduction <add>, %17, %cst_6 [0] : vector<50x50xf32> to vector<50xf32>
    %19 = vector.shape_cast %18 : vector<50xf32> to vector<1x50xf32>
    %c0_7 = arith.constant 0 : index
    %c0_8 = arith.constant 0 : index
    %20 = vector.load %arg3[%c0_7, %c0_8] : memref<1x50xf32, #tpu.memory_space<vmem>>, vector<1x50xf32>
    %cst_9 = arith.constant dense<0.000000e+00> : vector<1x50xf32>
    %21 = tpu.matmul %20, %17, %cst_9 {dimension_numbers = #tpu.dot_dimension_numbers<[1], [0], [0], [1], [0, 0, 1, 1], [], []>} : vector<1x50xf32>, vector<50x50xf32>, vector<1x50xf32> -> vector<1x50xf32>
    %22 = arith.divf %21, %19 : vector<1x50xf32>
    %c0_10 = arith.constant 0 : index
    %c0_11 = arith.constant 0 : index
    %23 = vector.load %arg4[%c0_10, %c0_11] : memref<1x50xf32, #tpu.memory_space<vmem>>, vector<1x50xf32>
    tpu.vector_store %arg4[%c0_10, %c0_11], %22 {strides = array<i32>} : memref<1x50xf32, #tpu.memory_space<vmem>>, vector<1x50xf32>,
    return
  }
}

</mosaic_0001>

<bundles_post_ra>
// kernel: tpu_custom_call.1
= control target key start
LH: loop header
LB: loop body
LE: loop exit
PB: predicated region body
PF: predicated region fallthrough
CT: control target
= control target key end

     0   :  { %s421_s0 = inlined_call_operand.<no memory space> [shape: f32[1], index: 0, kind: input, shape index: {}]   ;;  %s422_s1 = inlined_call_operand.vmem [shape: f32[1,50], index: 1, kind: input, shape index: {}]   ;;  %s423_s2 = inlined_call_operand.vmem [shape: f32[1,50], index: 2, kind: input, shape index: {}]   ;;  %s424_s3 = inlined_call_operand.vmem [shape: f32[1,50], index: 3, kind: input, shape index: {}]   ;;  %s425_s4 = inlined_call_operand.hbm [shape: f32[1,50], index: 4, kind: output, shape index: {}]  }
   0x1   :  { %v22_v0 = vld [vmem:[%s423_s2] sm:$0x1] }
   0x2   :  { %10 = vsyncpa [#allocation4], 0  ;;  %23 = vxpose.xlu0.b32.start.end [1/1] (short) (narrow) %v22_v0, 56  ;;  %v354_v1 = vmov 0   ;;  %v355_v9 = vmov 0.0   ;;  %vm356_vm0 = vmmov 0  }
   0x3   :  { %315 = vset.pattern.permute.xlu1 %v354_v1  ;;  %293 = vmatprep.subr.mxu0 %v355_v9  ;;  %s20_s18 = smul.f32 0.70710677, %s421_s0  ;;  %v282_v13 = vld [vmem:[%s422_s1] ss:$0 sm:$0xff]  ;;  %vm125_vm1 = vcmask 408576   ;;  %vm134_vm2 = vcmask 402432  }
   0x4   :  { %307 = vmatprep.mubr.msk.f32.mxu0 %vm356_vm0, %v355_v9  ;;  %vm190_vm3 = vcmask 1041408   ;;  %s357_s21 = smov [#allocation3]   ;;  %vm266_vm4 = vcmask 401408  }
   0x5   :  { %v103_v18 = vstv %s20_s18  ;;  %s274_s22 = sshll.u32 %s357_s21, 4  ;;  %s275_s22 = int_to_ptr.vmem [resolvable:$true] %s274_s22 }
   0x6   :  { %s336_s23 = scalar_lea.vmem %s275_s22, 32  ;;  %p337_p1 = scmp.lt.s32.totalorder %s275_s22, %s275_s22 }
  0x2b   :  { %314 = vset.pattern.permute.xlu0 %v354_v1 }
  0x7e   :  { %v39_v2 = vpop.trf.xlu0 }
  0x7f   :  { %63 = vperm.xlu0 %314, %v39_v2  }
  0x82   :  { %v40_v3 = vpop.trf.xlu0 }
  0x83   :  { %68 = vperm.xlu1 %315, %v40_v3  }
  0x86   :  { %v41_v4 = vpop.trf.xlu0 }
  0x87   :  { %73 = vperm.xlu1 %315, %v41_v4  }
  0x8a   :  { %v42_v5 = vpop.trf.xlu0 }
  0x8e   :  { %v43_v6 = vpop.trf.xlu0 }
  0x8f   :  { %83 = vperm.xlu1 %315, %v43_v6  }
  0x92   :  { %v44_v7 = vpop.trf.xlu0 }
  0x93   :  { %88 = vperm.xlu1 %315, %v44_v7  }
  0x96   :  { %v45_v8 = vpop.trf.xlu0 }
  0x97   :  { %93 = vperm.xlu1 %315, %v45_v8  }
  0x9b   :  { %78 = vperm.xlu1 %315, %v42_v5  }
  0xfa   :  { %v64_v12 = vpop.permute.xlu0 %63 }
  0xfb   :  { %v96_v17 = vsub.f32 %v282_v13, %v64_v12 }
  0xfd   :  { %v104_v24 = vmul.f32 %v103_v18, %v96_v17 }
  0xfe   :  { %v69_v10 = vpop.permute.xlu1 %68 }
  0xff   :  { %v97_v15 = vsub.f32 %v282_v13, %v69_v10  ;;  %v111_v32 = vmul.f32 %v104_v24, %v104_v24 }
 0x101   :  { %v105_v21 = vmul.f32 %v103_v18, %v97_v15  ;;  %v118_v41 = vsub.f32 0.0, %v111_v32 }
 0x102   :  { %v74_v11 = vpop.permute.xlu1 %73 }
 0x103   :  { %v98_v19 = vsub.f32 %v282_v13, %v74_v11  ;;  %v112_v28 = vmul.f32 %v105_v21, %v105_v21  ;;  %v126_v51 = vsel %vm125_vm1, %v118_v41, -inf }
 0x105   :  { %v106_v25 = vmul.f32 %v103_v18, %v98_v19  ;;  %v119_v37 = vsub.f32 0.0, %v112_v28 }
 0x107   :  { %v113_v33 = vmul.f32 %v106_v25, %v106_v25  ;;  %v127_v46 = vsel %vm125_vm1, %v119_v37, -inf }
 0x109   :  { %v120_v42 = vsub.f32 0.0, %v113_v33 }
 0x10a   :  { %v84_v14 = vpop.permute.xlu1 %83 }
 0x10b   :  { %v100_v16 = vsub.f32 %v282_v13, %v84_v14  ;;  %v128_v52 = vsel %vm125_vm1, %v120_v42, -inf }
 0x10d   :  { %v108_v22 = vmul.f32 %v103_v18, %v100_v16 }
 0x10e   :  { %v89_v20 = vpop.permute.xlu1 %88 }
 0x10f   :  { %v101_v23 = vsub.f32 %v282_v13, %v89_v20  ;;  %v115_v29 = vmul.f32 %v108_v22, %v108_v22 }
 0x111   :  { %v109_v26 = vmul.f32 %v103_v18, %v101_v23  ;;  %v122_v38 = vsub.f32 0.0, %v115_v29 }
 0x112   :  { %v94_v27 = vpop.permute.xlu1 %93 }
 0x113   :  { %v116_v30 = vmul.f32 %v109_v26, %v109_v26  ;;  %v102_v31 = vsub.f32 %v282_v13, %v94_v27  ;;  %v130_v47 = vsel %vm125_vm1, %v122_v38, -inf }
 0x114   :  { %v131_v54 = vmax.f32 %v126_v51, %v130_v47 }
 0x115   :  { %v123_v34 = vsub.f32 0.0, %v116_v30  ;;  %v110_v35 = vmul.f32 %v103_v18, %v102_v31 }
 0x116   :  { %v79_v36 = vpop.permute.xlu1 %78 }
 0x117   :  { %v117_v39 = vmul.f32 %v110_v35, %v110_v35  ;;  %v99_v40 = vsub.f32 %v282_v13, %v79_v36  ;;  %v132_v43 = vsel %vm125_vm1, %v123_v34, -inf }
 0x118   :  { %v133_v50 = vmax.f32 %v127_v46, %v132_v43 }
 0x119   :  { %v124_v44 = vsub.f32 0.0, %v117_v39  ;;  %v107_v45 = vmul.f32 %v103_v18, %v99_v40 }
 0x11a   :  { %v137_v57 = vmax.f32 %v131_v54, %v133_v50 }
 0x11b   :  { %v135_v48 = vsel %vm134_vm2, %v124_v44, -inf  ;;  %v114_v49 = vmul.f32 %v107_v45, %v107_v45 }
 0x11c   :  { %v136_v55 = vmax.f32 %v128_v52, %v135_v48 }
 0x11d   :  { %v121_v53 = vsub.f32 0.0, %v114_v49 }
 0x11f   :  { %v129_v56 = vsel %vm125_vm1, %v121_v53, -inf }
 0x120   :  { %v138_v58 = vmax.f32 %v136_v55, %v129_v56 }
 0x122   :  { %v139_v59 = vmax.f32 %v137_v57, %v138_v58 }
 0x124   :  { %v140_v60 = vrot.slane %v139_v59, 4 }
 0x126   :  { %v141_v61 = vmax.f32 %v139_v59, %v140_v60 }
 0x128   :  { %v142_v62 = vrot.slane %v141_v61, 2 }
 0x12a   :  { %v143_v63 = vmax.f32 %v141_v61, %v142_v62 }
 0x12c   :  { %v144_v0 = vrot.slane %v143_v63, 1 }
 0x12e   :  { %v145_v1 = vmax.f32 %v143_v63, %v144_v0 }
 0x130   :  { %v146_v2 = vsub.f32 %v118_v41, %v145_v1  ;;  %v147_v3 = vsub.f32 %v119_v37, %v145_v1  ;;  %v148_v4 = vsub.f32 %v120_v42, %v145_v1  ;;  %v149_v5 = vsub.f32 %v121_v53, %v145_v1  ;;  %v186_v37 = vld [vmem:[%s424_s3] sm:$0x1]  ;;  %s332_s3 = scalar_lea.vmem %s275_s22, 16 }
 0x131   :  { %v150_v6 = vsub.f32 %v122_v38, %v145_v1  ;;  %v152_v7 = vsub.f32 %v124_v44, %v145_v1  ;;  %v151_v13 = vsub.f32 %v123_v34, %v145_v1  ;;  %p333_p0 = scmp.ne.s32.totalorder %s275_s22, %s332_s3  ;;  %p338_p2 = scmp.lt.s32.totalorder %s336_s23, %s332_s3 }
 0x132   :  { %v153_v8 = vmul.f32 1.442695, %v146_v2  ;;  %v155_v10 = vmul.f32 1.442695, %v147_v3  ;;  %v157_v11 = vmul.f32 1.442695, %v148_v4 }
 0x133   :  { %v159_v12 = vmul.f32 1.442695, %v149_v5  ;;  %v161_v14 = vmul.f32 1.442695, %v150_v6  ;;  %v165_v15 = vmul.f32 1.442695, %v152_v7  ;;  %p339_p3 = por %p338_p2, %p337_p1 }
 0x134   :  { %316 = vpow2.f32 %v153_v8  ;;  %v163_v16 = vmul.f32 1.442695, %v151_v13 }
 0x135   :  { %318 = vpow2.f32 %v155_v10  ;;  %p340_p4 = pnand %p339_p3, %p333_p0 }
 0x136   :  { %320 = vpow2.f32 %v157_v11 }
 0x137   :  { %322 = vpow2.f32 %v159_v12 }
 0x138   :  { %324 = vpow2.f32 %v161_v14 }
 0x139   :  { %326 = vpow2.f32 %v165_v15 }
 0x13a   :  { %328 = vpow2.f32 %v163_v16 }
 0x141   :  { %v317_v17 = vpop.eup %316 }
 0x142   :  { %v319_v18 = vpop.eup %318  ;;  %v167_v19 = vsel %vm125_vm1, %v317_v17, 0.0 }
 0x143   :  { %v321_v20 = vpop.eup %320  ;;  %v168_v21 = vsel %vm125_vm1, %v319_v18, 0.0 }
 0x144   :  { %v323_v22 = vpop.eup %322  ;;  %v169_v23 = vadd.f32 %v168_v21, %v167_v19  ;;  %v170_v25 = vsel %vm125_vm1, %v321_v20, 0.0 }
 0x145   :  { %v325_v24 = vpop.eup %324  ;;  %v172_v28 = vsel %vm125_vm1, %v323_v22, 0.0 }
 0x146   :  { %v327_v26 = vpop.eup %326  ;;  %v171_v27 = vadd.f32 %v170_v25, %v169_v23  ;;  %v174_v32 = vsel %vm125_vm1, %v325_v24, 0.0 }
 0x147   :  { %294 = vmatpush3.msk.msra.mxu0 %vm190_vm3, %v327_v26  ;;  %v178_v29 = vsel %vm134_vm2, %v327_v26, 0.0  ;;  %v329_v30 = vpop.eup %328 }
 0x148   :  { %v173_v31 = vadd.f32 %v172_v28, %v171_v27  ;;  %295 = vmatprep.subr.mxu0 %v355_v9  ;;  %v176_v34 = vsel %vm125_vm1, %v329_v30, 0.0 }
 0x149   :  { %296 = vmatpush3.msra.mxu0 %v329_v30 }
 0x14a   :  { %v175_v33 = vadd.f32 %v174_v32, %v173_v31  ;;  %297 = vmatprep.subr.mxu0 %v355_v9 }
 0x14b   :  { %298 = vmatpush3.msra.mxu0 %v325_v24 }
 0x14c   :  { %299 = vmatprep.subr.mxu0 %v355_v9  ;;  %v177_v35 = vadd.f32 %v176_v34, %v175_v33 }
 0x14d   :  { %300 = vmatpush3.msra.mxu0 %v323_v22 }
 0x14e   :  { %301 = vmatprep.subr.mxu0 %v355_v9  ;;  %v179_v36 = vadd.f32 %v178_v29, %v177_v35 }
 0x14f   :  { %302 = vmatpush3.msra.mxu0 %v321_v20 }
 0x150   :  { %303 = vmatprep.subr.mxu0 %v355_v9  ;;  %v180_v38 = vrot.slane %v179_v36, 4 }
 0x151   :  { %304 = vmatpush3.msra.mxu0 %v319_v18 }
 0x152   :  { %305 = vmatprep.subr.mxu0 %v355_v9  ;;  %v181_v39 = vadd.f32 %v180_v38, %v179_v36 }
 0x153   :  { %306 = vmatpush3.msra.mxu0 %v317_v17 }
 0x154   :  { %308 = vmatmul.mubr.msk.f32.vlgmr.msra.gmra.mxu0 %vm125_vm1, %v186_v37  ;;  %v182_v40 = vrot.slane %v181_v39, 2 }
 0x156   :  { %v183_v41 = vadd.f32 %v182_v40, %v181_v39 }
 0x158   :  { %v184_v42 = vrot.slane %v183_v41, 1 }
 0x15a   :  { %v185_v43 = vadd.f32 %v184_v42, %v183_v41 }
 0x15c   :  { %330 = vrcp.f32 %v185_v43 }
 0x169   :  { %v331_v44 = vpop.eup %330 }
 0x214   :  { %v260_v45 = vpop.f32.mrf.mxu0 }
 0x215   :  { %v265_v46 = vmul.f32 %v331_v44, %v260_v45 }
 0x216   :  { %v309_v47 = vpop.f32.mrf.mxu0 }
 0x217   :  { %267 = vst.msk [vmem:[#allocation3] sm:$0x1] %vm266_vm4, %v265_v46 }
 0x218   :  { %343 = shalt.err (!%p340_p4)
}
 0x219   :  { %277 = dma.vmem_to_hbm [thread:$0]  %s275_s22, 16, %s425_s4, [#allocation4]  }
 0x21a   :  { %352 = dma.done.wait [#allocation4], 16  }
 0x21b   :  { %353 = vsyncadd [#allocation4], 4294967280 }
 0x21c   :  { %281 = vsyncpa [#allocation4], 1 }

</bundles_post_ra>
